<compile_context>
chip_gen: v5e
topology: v5e:2x2
jax: 0.10.0
libtpu: 0.0.40
codegen_flags: <defaults>
</compile_context>

<pallas_src>
import functools

import jax
import jax.numpy as jnp
from jax.experimental import pallas as pl
from jax.experimental.pallas import tpu as pltpu

_LANES = 128


# ----------------------------------------------------------------------------
# Kernel: per-element GAN loss + streaming sum + mean (scalar out in SMEM)
# ----------------------------------------------------------------------------
def _gan_loss_kernel(x_ref, o_ref, *, mode, target_is_real, n_valid,
                     block_elems, inv_n):
    i = pl.program_id(0)

    @pl.when(i == 0)
    def _():
        o_ref[0, 0] = jnp.float32(0.0)

    x = x_ref[...]                                   # (block_rows, 128) f32
    rows, lanes = x.shape

    # Global flat index of each element (for masking the padded tail).
    ridx = jax.lax.broadcasted_iota(jnp.int32, (rows, lanes), 0)
    lidx = jax.lax.broadcasted_iota(jnp.int32, (rows, lanes), 1)
    flat = i * block_elems + ridx * lanes + lidx
    valid = flat < n_valid

    t = jnp.float32(1.0 if target_is_real else 0.0)
    if mode == "vanilla":
        # BCEWithLogitsLoss, numerically stable form.
        per = jnp.maximum(x, 0.0) - x * t + jnp.log1p(jnp.exp(-jnp.abs(x)))
    elif mode == "bce":
        # BCELoss on probabilities (clamped like PyTorch to keep log finite).
        eps = jnp.float32(1e-12)
        per = -(t * jnp.log(jnp.maximum(x, eps))
                + (1.0 - t) * jnp.log(jnp.maximum(1.0 - x, eps)))
    elif mode == "lsgan":
        d = x - t
        per = d * d
    elif mode == "wgangp":
        per = -x if target_is_real else x
    else:
        raise NotImplementedError(f"Loss {mode} is not implemented")

    o_ref[0, 0] += jnp.sum(jnp.where(valid, per, 0.0))

    @pl.when(i == pl.num_programs(0) - 1)
    def _():
        o_ref[0, 0] *= jnp.float32(inv_n)            # mean (reciprocal multiply)


# ----------------------------------------------------------------------------
# Wrapper: flatten -> lane-dense (rows, 128), tile rows, single pallas_call
# ----------------------------------------------------------------------------
def gan_loss(inp, trg_is_real, loss="vanilla", *, block_rows=1024):
    x = jnp.asarray(inp, jnp.float32).reshape(-1)
    n = x.size

    rows = pl.cdiv(n, _LANES)
    rows = max(8, ((rows + 7) // 8) * 8)             # sublane multiple
    br = min(block_rows, rows)                       # rows per grid step
    num_blocks = pl.cdiv(rows, br)
    rows_padded = num_blocks * br

    pad = rows_padded * _LANES - n
    if pad:
        x = jnp.pad(x, (0, pad))                     # tail masked in-kernel
    x2 = x.reshape(rows_padded, _LANES)

    kern = functools.partial(
        _gan_loss_kernel,
        mode=loss,
        target_is_real=bool(trg_is_real),
        n_valid=n,
        block_elems=br * _LANES,
        inv_n=1.0 / n,
    )

    out = pl.pallas_call(
        kern,
        out_shape=jax.ShapeDtypeStruct((1, 1), jnp.float32),
        grid=(num_blocks,),
        in_specs=[pl.BlockSpec((br, _LANES), lambda i: (i, 0))],
        out_specs=pl.BlockSpec(memory_space=pltpu.MemorySpace.SMEM),
        compiler_params=pltpu.CompilerParams(
            dimension_semantics=("arbitrary",)),     # reduction axis
    )(x2)
    return out[0, 0]


# ----------------------------------------------------------------------------
# Pure-jnp reference (for an in-script sanity check)
# ----------------------------------------------------------------------------
def _reference(x, trg_is_real, mode):
    x = x.astype(jnp.float32)
    t = 1.0 if trg_is_real else 0.0
    if mode == "vanilla":
        return jnp.mean(jnp.maximum(x, 0.0) - x * t
                        + jnp.log1p(jnp.exp(-jnp.abs(x))))
    if mode == "bce":
        eps = 1e-12
        return jnp.mean(-(t * jnp.log(jnp.maximum(x, eps))
                          + (1.0 - t) * jnp.log(jnp.maximum(1.0 - x, eps))))
    if mode == "lsgan":
        return jnp.mean((x - t) ** 2)
    if mode == "wgangp":
        return -jnp.mean(x) if trg_is_real else jnp.mean(x)
    raise NotImplementedError(mode)


if __name__ == "__main__":
    key = jax.random.PRNGKey(0)
    # Discriminator logits, PatchGAN-style output (N, C, H, W).
    logits = jax.random.normal(key, (2, 4, 16, 16), jnp.float32)
    probs = jax.nn.sigmoid(logits)                   # for the 'bce' variant

    cases = [
        ("vanilla", logits, True), ("vanilla", logits, False),
        ("lsgan", logits, True), ("lsgan", logits, False),
        ("wgangp", logits, True), ("wgangp", logits, False),
        ("bce", probs, True), ("bce", probs, False),
    ]

    ok = True
    for mode, arr, trg in cases:
        f = jax.jit(lambda a, m=mode, t=trg: gan_loss(a, t, loss=m))
        got = f(arr)
        jax.block_until_ready(got)
        want = _reference(arr, trg, mode)
        if not jnp.allclose(got, want, atol=1e-5, rtol=1e-5):
            ok = False
            print(f"MISMATCH mode={mode} trg={trg}: got={got} want={want}")

    if ok:
        print("KERNEL_OK")
</pallas_src>

<mosaic_0001>
module attributes {stable_mosaic.version = 11 : i64} {
  func.func @_gan_loss_kernel(%arg0: i32, %arg1: memref<16x128xf32, #tpu.memory_space<vmem>>, %arg2: memref<1x1xf32, #tpu.memory_space<smem>>) attributes {dimension_semantics = [#tpu.dimension_semantics<arbitrary>], iteration_bounds = array<i64: 1>, scalar_prefetch = 0 : i64, scratch_operands = 0 : i64, tpu.core_type = #tpu.core_type<tc>, window_params = [{transform_indices = @transform_0, window_bounds = array<i64: 16, 128>}, {transform_indices = @transform_1, window_bounds = array<i64: 1, 1>}]} {
    %c0_i32 = arith.constant 0 : i32
    %0 = arith.cmpi eq, %arg0, %c0_i32 : i32
    %1 = arith.extui %0 : i1 to i32
    %c0_i32_0 = arith.constant 0 : i32
    %2 = arith.cmpi ne, %1, %c0_i32_0 : i32
    scf.if %2 {
      %cst_13 = arith.constant 0.000000e+00 : f32
      %c0_14 = arith.constant 0 : index
      %c0_15 = arith.constant 0 : index
      %37 = memref.load %arg2[%c0_14, %c0_15] : memref<1x1xf32, #tpu.memory_space<smem>>
      memref.store %cst_13, %arg2[%c0_14, %c0_15] : memref<1x1xf32, #tpu.memory_space<smem>>
    } else {
    }
    %c0 = arith.constant 0 : index
    %c0_1 = arith.constant 0 : index
    %3 = vector.load %arg1[%c0, %c0_1] : memref<16x128xf32, #tpu.memory_space<vmem>>, vector<16x128xf32>
    %4 = tpu.iota {dimensions = array<i32: 0>} : vector<16x128xi32>
    %5 = tpu.iota {dimensions = array<i32: 1>} : vector<16x128xi32>
    %c2048_i32 = arith.constant 2048 : i32
    %6 = arith.muli %arg0, %c2048_i32 : i32
    %c128_i32 = arith.constant 128 : i32
    %7 = vector.broadcast %c128_i32 : i32 to vector<16x128xi32>
    %8 = arith.muli %4, %7 : vector<16x128xi32>
    %9 = vector.broadcast %6 : i32 to vector<16x128xi32>
    %10 = arith.addi %9, %8 : vector<16x128xi32>
    %11 = arith.addi %10, %5 : vector<16x128xi32>
    %c2048_i32_2 = arith.constant 2048 : i32
    %12 = vector.broadcast %c2048_i32_2 : i32 to vector<16x128xi32>
    %13 = arith.cmpi slt, %11, %12 : vector<16x128xi32>
    %cst = arith.constant 0.000000e+00 : f32
    %14 = vector.broadcast %cst : f32 to vector<16x128xf32>
    %15 = arith.maximumf %3, %14 : vector<16x128xf32>
    %cst_3 = arith.constant 1.000000e+00 : f32
    %16 = vector.broadcast %cst_3 : f32 to vector<16x128xf32>
    %17 = arith.mulf %3, %16 : vector<16x128xf32>
    %18 = arith.subf %15, %17 : vector<16x128xf32>
    %19 = math.absf %3 : vector<16x128xf32>
    %cst_4 = arith.constant 0.000000e+00 : f32
    %20 = vector.broadcast %cst_4 : f32 to vector<16x128xf32>
    %21 = arith.subf %20, %19 : vector<16x128xf32>
    %22 = math.exp %21 : vector<16x128xf32>
    %23 = math.log1p %22 : vector<16x128xf32>
    %24 = arith.addf %18, %23 : vector<16x128xf32>
    %c0_5 = arith.constant 0 : index
    %c0_6 = arith.constant 0 : index
    %25 = memref.load %arg2[%c0_5, %c0_6] : memref<1x1xf32, #tpu.memory_space<smem>>
    %cst_7 = arith.constant 0.000000e+00 : f32
    %26 = vector.broadcast %cst_7 : f32 to vector<16x128xf32>
    %27 = arith.select %13, %24, %26 : vector<16x128xi1>, vector<16x128xf32>
    %28 = vector.shape_cast %27 : vector<16x128xf32> to vector<1x16x128xf32>
    %cst_8 = arith.constant dense<0.000000e+00> : vector<1xf32>
    %29 = vector.multi_reduction <add>, %28, %cst_8 [1, 2] : vector<1x16x128xf32> to vector<1xf32>
    %30 = vector.shape_cast %29 : vector<1xf32> to vector<1x1x1xf32>
    %31 = vector.extract %30[0, 0, 0] : f32 from vector<1x1x1xf32>
    %32 = arith.addf %25, %31 : f32
    %c0_9 = arith.constant 0 : index
    %c0_10 = arith.constant 0 : index
    %33 = memref.load %arg2[%c0_9, %c0_10] : memref<1x1xf32, #tpu.memory_space<smem>>
    memref.store %32, %arg2[%c0_9, %c0_10] : memref<1x1xf32, #tpu.memory_space<smem>>
    %c0_i32_11 = arith.constant 0 : i32
    %34 = arith.cmpi eq, %arg0, %c0_i32_11 : i32
    %35 = arith.extui %34 : i1 to i32
    %c0_i32_12 = arith.constant 0 : i32
    %36 = arith.cmpi ne, %35, %c0_i32_12 : i32
    scf.if %36 {
      %c0_13 = arith.constant 0 : index
      %c0_14 = arith.constant 0 : index
      %37 = memref.load %arg2[%c0_13, %c0_14] : memref<1x1xf32, #tpu.memory_space<smem>>
      %cst_15 = arith.constant 4.8828125E-4 : f32
      %38 = arith.mulf %37, %cst_15 : f32
      %c0_16 = arith.constant 0 : index
      %c0_17 = arith.constant 0 : index
      %39 = memref.load %arg2[%c0_16, %c0_17] : memref<1x1xf32, #tpu.memory_space<smem>>
      memref.store %38, %arg2[%c0_16, %c0_17] : memref<1x1xf32, #tpu.memory_space<smem>>
    } else {
    }
    return
  }
  func.func @transform_0(%arg0: i32) -> (i32, i32) {
    %c0_i32 = arith.constant 0 : i32
    %c0_i32_0 = arith.constant 0 : i32
    return %arg0, %c0_i32 : i32, i32
  }
  func.func @transform_1(%arg0: i32) -> (i32, i32) {
    %c0_i32 = arith.constant 0 : i32
    %c0_i32_0 = arith.constant 0 : i32
    %c0_i32_1 = arith.constant 0 : i32
    return %c0_i32, %c0_i32_0 : i32, i32
  }
}

</mosaic_0001>

<bundles_post_ra>
// kernel: _lambda_.1
= control target key start
LH: loop header
LB: loop body
LE: loop exit
PB: predicated region body
PF: predicated region fallthrough
CT: control target
= control target key end

     0   :  { %s147_s0 = inlined_call_operand.vmem [shape: f32[16,128], index: 0, kind: input, shape index: {}]   ;;  %s148_s1 = inlined_call_operand.hbm [shape: f32[1,1], index: 1, kind: output, shape index: {}]  }
   0x1   :  { %v15_v0 = vld [vmem:[%s147_s0] sm:$0xff]  ;;  %v16_v1 = vld [vmem:[%s147_s0 + $0x8] sm:$0xff] }
   0x2   :  { %6 = vsyncpa [#allocation3], 0  ;;  %v36_v2 = vand.u32 2147483647, %v15_v0  ;;  %v37_v3 = vand.u32 2147483647, %v16_v1  ;;  %v17_v8 = vlaneseq }
   0x3   :  { %v32_v21 = vmax.f32 %v15_v0, 0.0  ;;  %v33_v24 = vmax.f32 %v16_v1, 0.0  ;;  %s91_s11 = sshll.u32 %s148_s1, 4  ;;  %s127_s14 = smov [#allocation2]   ;;  %s92_s11 = int_to_ptr.hbm [resolvable:$true] %s91_s11 }
   0x4   :  { %v38_v4 = vsub.f32 0.0, %v36_v2  ;;  %v39_v5 = vsub.f32 0.0, %v37_v3  ;;  %v18_v9 = vshrl.u32 %v17_v8, 7  ;;  %v21_v17 = vand.u32 127, %v17_v8 }
   0x5   :  { %v34_v30 = vsub.f32 %v32_v21, %v15_v0  ;;  %v35_v33 = vsub.f32 %v33_v24, %v16_v1 }
   0x6   :  { %v40_v6 = vmul.f32 1.442695, %v38_v4  ;;  %v42_v7 = vmul.f32 1.442695, %v39_v5  ;;  %v19_v12 = vadd.s32 8, %v18_v9  ;;  %v23_v18 = vmul.u32 128, %v18_v9 }
   0x8   :  { %105 = vpow2.f32 %v40_v6  ;;  %v24_v20 = vmul.u32 128, %v19_v12  ;;  %v28_v26 = vadd.s32 %v23_v18, %v21_v17 }
   0x9   :  { %107 = vpow2.f32 %v42_v7 }
   0xa   :  { %v29_v29 = vadd.s32 %v24_v20, %v21_v17  ;;  %vm30_vm2 = vcmp.lt.s32.totalorder %v28_v26, 2048 }
   0xc   :  { %vm31_vm3 = vcmp.lt.s32.totalorder %v29_v29, 2048 }
   0xe   :  { %v106_v10 = vpop.eup %105 }
   0xf   :  { %v108_v11 = vpop.eup %107  ;;  %v44_v13 = vadd.f32 1.0, %v106_v10  ;;  %v47_v14 = vmul.f32 -0.5, %v106_v10  ;;  %v50_v22 = vand.u32 2147483647, %v106_v10 }
  0x10   :  { %v53_v15 = vadd.f32 1.0, %v108_v11  ;;  %v56_v16 = vmul.f32 -0.5, %v108_v11  ;;  %v59_v25 = vand.u32 2147483647, %v108_v11 }
  0x11   :  { %109 = vlog2.f32 %v44_v13  ;;  %v48_v19 = vadd.f32 1.0, %v47_v14  ;;  %vm51_vm0 = vcmp.lt.f32.partialorder %v50_v22, 0.0004427343 }
  0x12   :  { %111 = vlog2.f32 %v53_v15  ;;  %v57_v23 = vadd.f32 1.0, %v56_v16  ;;  %vm60_vm1 = vcmp.lt.f32.partialorder %v59_v25, 0.0004427343 }
  0x13   :  { %v49_v27 = vmul.f32 %v106_v10, %v48_v19 }
  0x14   :  { %v58_v31 = vmul.f32 %v108_v11, %v57_v23 }
  0x17   :  { %v110_v28 = vpop.eup %109 }
  0x18   :  { %v112_v32 = vpop.eup %111  ;;  %v46_v34 = vmul.f32 0.6931472, %v110_v28 }
  0x19   :  { %v55_v35 = vmul.f32 0.6931472, %v112_v32 }
  0x1a   :  { %v52_v36 = vsel %vm51_vm0, %v49_v27, %v46_v34 }
  0x1b   :  { %v61_v37 = vsel %vm60_vm1, %v58_v31, %v55_v35  ;;  %v62_v38 = vadd.f32 %v52_v36, %v34_v30 }
  0x1c   :  { %v63_v39 = vadd.f32 %v61_v37, %v35_v33 }
  0x1d   :  { %v65_v40 = vsel %vm30_vm2, %v62_v38, 0.0 }
  0x1e   :  { %v66_v41 = vsel %vm31_vm3, %v63_v39, 0.0 }
  0x1f   :  { %v67_v42 = vadd.f32 %v66_v41, %v65_v40 }
  0x21   :  { %68 = vadd.xlane.f32.xlu0 %v67_v42 }
  0x94   :  { %v69_v43 = vpop.xlane.xlu0 %68 }
  0x95   :  { %v70_v44 = vrot.slane %v69_v43, 4 }
  0x97   :  { %v71_v45 = vadd.f32 %v70_v44, %v69_v43 }
  0x99   :  { %v72_v46 = vrot.slane %v71_v45, 2 }
  0x9b   :  { %v73_v47 = vadd.f32 %v72_v46, %v71_v45 }
  0x9d   :  { %v74_v48 = vrot.slane %v73_v47, 1 }
  0x9f   :  { %v75_v49 = vadd.f32 %v74_v48, %v73_v47 }
  0xa1   :  { %101 = vpush %v75_v49 }
  0xd2   :  { %s102_s12 = spop %101 }
  0xd3   :  { %s84_s13 = smul.f32 0.00048828125, %s102_s12 }
  0xd5   :  { %85 = sst [smem:[#allocation2]] %s84_s13 }
  0xd6   :  { %94 = dma.smem_to_hbm %s127_s14, 16, %s92_s11, [#allocation3]  }
  0xd7   :  { %125 = dma.done.wait [#allocation3], 16  }
  0xd8   :  { %126 = vsyncadd [#allocation3], 4294967280 }
  0xd9   :  { %99 = sfence }
  0xda   :  { %100 = vsyncpa [#allocation3], 1 }

</bundles_post_ra>
